<compile_context>
chip_gen: v5e
topology: v5e:2x2
jax: 0.10.0
libtpu: 0.0.40
codegen_flags: <defaults>
</compile_context>

<pallas_src>
import jax
import jax.numpy as jnp
from jax.experimental import pallas as pl
from jax.experimental.pallas import tpu as pltpu

# ------------- packed, lane-dense parameter slab layout: (48, 128) -------------
IN_FEATS = 4        # CartPole state dim
IN_PAD = 8          # input features padded 4 -> 8 (one fp32 sublane tile)
HID = 32
N_ACT = 2           # Q-values
HEAD_PAD = 8        # head outputs padded 2 -> 8 sublanes
SLAB_ROWS = 48
SLAB_COLS = 128

# rows [ 0:32): lanes [ 0: 8)=w1 (out, in_pad)   lanes [8:12)=b1|b2|b3|bh (cols)
#               lanes [32:64)=w2                 lanes [64:96)=w3
# rows [32:40): lanes [ 0:32)=head weight (out_pad, in)
_W1_C = 0
_B_C = 8
_W2_C = 32
_W3_C = 64
_WH_R = 32


def dqn_kernel(x_ref, w_ref, o_ref):
    """One batch tile: x (IN_PAD, TB) fp32 -> Q (HEAD_PAD, TB) fp32, batch on lanes."""
    cdt = w_ref.dtype                                    # MXU operand dtype (f32/bf16)
    w = w_ref[...]                                       # whole (48,128) slab, resident

    w1 = w[0:HID, _W1_C:_W1_C + IN_PAD]                  # (32, 8)
    w2 = w[0:HID, _W2_C:_W2_C + HID]                     # (32, 32)
    w3 = w[0:HID, _W3_C:_W3_C + HID]                     # (32, 32)
    wh = w[_WH_R:_WH_R + HEAD_PAD, 0:HID]                # (8, 32)
    bias = w[0:HID, _B_C:_B_C + 4].astype(jnp.float32)   # (32, 4)
    b1 = bias[:, 0:1]                                    # (32, 1) lane-broadcast on add
    b2 = bias[:, 1:2]
    b3 = bias[:, 2:3]
    bh = bias[0:HEAD_PAD, 3:4]                           # (8, 1)

    x = x_ref[...].astype(cdt)                           # fp32 in HBM; cast for the MXU
    # MXU matmuls with fp32 accumulation; bias add / ReLU on the VPU in fp32.
    h = jnp.maximum(jnp.dot(w1, x, preferred_element_type=jnp.float32) + b1, 0.0)
    h = jnp.maximum(jnp.dot(w2, h.astype(cdt), preferred_element_type=jnp.float32) + b2, 0.0)
    h = jnp.maximum(jnp.dot(w3, h.astype(cdt), preferred_element_type=jnp.float32) + b3, 0.0)
    q = jnp.dot(wh, h.astype(cdt), preferred_element_type=jnp.float32) + bh
    o_ref[...] = q.astype(o_ref.dtype)                   # lane-dense store


def dqn_forward(x, slab, *, tile_b=4096):
    """x: (B, 4) fp32, slab: packed (48,128) params. Returns (B, 2) fp32 Q-values."""
    assert tile_b >= 128 and tile_b % 128 == 0, "batch tile must be a multiple of 128 lanes"
    B = x.shape[0]
    b128 = pl.cdiv(B, 128) * 128                         # lane-aligned batch
    # Clamp the tile so the grid keeps >=2 steps when the batch allows it, letting
    # the "parallel" batch axis shard across v7x's 2 TensorCores (no-op on 1 TC).
    tb = max(128, min(tile_b, (b128 // 2) // 128 * 128))
    b_pad = pl.cdiv(B, tb) * tb

    # Wrapper-side layout plumbing: (B,4) -> (IN_PAD, b_pad) fp32, batch on lanes.
    xt = jnp.zeros((IN_PAD, b_pad), jnp.float32).at[:IN_FEATS, :B].set(
        x.astype(jnp.float32).T)

    out = pl.pallas_call(
        dqn_kernel,
        out_shape=jax.ShapeDtypeStruct((HEAD_PAD, b_pad), jnp.float32),
        grid=(b_pad // tb,),
        in_specs=[
            # activations: pipelined per batch tile, fp32 (8,128)-aligned blocks
            pl.BlockSpec((IN_PAD, tb), lambda i: (0, i)),
            # packed lane-dense weights/biases: one DMA, resident across the grid
            pl.BlockSpec((SLAB_ROWS, SLAB_COLS), lambda i: (0, 0)),
        ],
        out_specs=pl.BlockSpec((HEAD_PAD, tb), lambda i: (0, i)),
        compiler_params=pltpu.CompilerParams(
            dimension_semantics=("parallel",),   # shard batch tiles across TCs (v7x)
        ),
    )(xt, slab)

    # TODO(synk): for the B~8 greedy-action path, fuse argmax into the kernel
    # epilogue and take/return the (features, B) layout to drop these XLA ops.
    return out[:N_ACT, :B].T                             # (B, 2)


def init_params(key):
    """nn.Linear-style init; weights kept in PyTorch (out, in) layout."""
    dims = [(4, 32), (32, 32), (32, 32), (32, 2)]
    params = []
    for d_in, d_out in dims:
        key, kw, kb = jax.random.split(key, 3)
        bound = 1.0 / jnp.sqrt(d_in)
        w = jax.random.uniform(kw, (d_out, d_in), jnp.float32, -bound, bound)
        b = jax.random.uniform(kb, (d_out,), jnp.float32, -bound, bound)
        params.append((w, b))
    return params


def pack_params(params, dtype=jnp.bfloat16):
    """Pack all weights & biases into one lane-dense, zero-padded (48,128) slab."""
    (w1, b1), (w2, b2), (w3, b3), (wh, bh) = params
    slab = jnp.zeros((SLAB_ROWS, SLAB_COLS), jnp.float32)
    slab = slab.at[0:HID, _W1_C:_W1_C + IN_FEATS].set(w1)     # in-dim padded 4 -> 8
    slab = slab.at[0:HID, _B_C + 0].set(b1)
    slab = slab.at[0:HID, _B_C + 1].set(b2)
    slab = slab.at[0:HID, _B_C + 2].set(b3)
    slab = slab.at[0:N_ACT, _B_C + 3].set(bh)
    slab = slab.at[0:HID, _W2_C:_W2_C + HID].set(w2)
    slab = slab.at[0:HID, _W3_C:_W3_C + HID].set(w3)
    slab = slab.at[_WH_R:_WH_R + N_ACT, 0:HID].set(wh)        # head rows padded 2 -> 8
    return slab.astype(dtype)


def dqn_reference(x, params, param_dtype=jnp.float32):
    """Pure-JAX reference matching the PyTorch module (params rounded to param_dtype)."""
    cast = lambda a: a.astype(param_dtype).astype(jnp.float32)
    (w1, b1), (w2, b2), (w3, b3), (wh, bh) = params
    h = jax.nn.relu(x @ cast(w1).T + cast(b1))
    h = jax.nn.relu(h @ cast(w2).T + cast(b2))
    h = jax.nn.relu(h @ cast(w3).T + cast(b3))
    return h @ cast(wh).T + cast(bh)


if __name__ == "__main__":
    key = jax.random.PRNGKey(0)
    key, kx = jax.random.split(key)
    params = init_params(key)
    fwd = jax.jit(dqn_forward)            # default tile_b=4096, clamped per batch

    # --- small (action-selection-sized) batch, fp32 slab -------------------------
    batch = 8
    x = jax.random.normal(kx, (batch, 4), jnp.float32)
    slab_f32 = pack_params(params, dtype=jnp.float32)
    out_f32 = jax.block_until_ready(fwd(x, slab_f32))
    ref_f32 = dqn_reference(x, params, jnp.float32)
    assert out_f32.shape == (batch, 2)
    assert jnp.allclose(out_f32, ref_f32, atol=1e-2, rtol=1e-2)

    # --- bf16 MXU operands (native on v6e/v7x), fp32 accumulation ----------------
    slab_bf16 = pack_params(params, dtype=jnp.bfloat16)
    out_bf16 = jax.block_until_ready(fwd(x, slab_bf16))
    ref_bf16 = dqn_reference(x, params, jnp.bfloat16)
    assert out_bf16.shape == (batch, 2)
    assert jnp.allclose(out_bf16, ref_bf16, atol=3e-2, rtol=3e-2)

    # --- replay-sized batch: exercises the clamped (>=2-step) grid + padding -----
    key, kx2 = jax.random.split(key)
    batch2 = 1000                         # tile clamps to 512 -> 2 grid steps
    x2 = jax.random.normal(kx2, (batch2, 4), jnp.float32)
    out2 = jax.block_until_ready(fwd(x2, slab_f32))
    ref2 = dqn_reference(x2, params, jnp.float32)
    assert out2.shape == (batch2, 2)
    assert jnp.allclose(out2, ref2, atol=1e-2, rtol=1e-2)

    print("KERNEL_OK")
</pallas_src>

<mosaic_0001>
module attributes {stable_mosaic.version = 11 : i64} {
  func.func @dqn_kernel(%arg0: i32, %arg1: memref<8x128xf32, #tpu.memory_space<vmem>>, %arg2: memref<48x128xf32, #tpu.memory_space<vmem>>, %arg3: memref<8x128xf32, #tpu.memory_space<vmem>>) attributes {dimension_semantics = [#tpu.dimension_semantics<parallel>], iteration_bounds = array<i64: 1>, scalar_prefetch = 0 : i64, scratch_operands = 0 : i64, tpu.core_type = #tpu.core_type<tc>, window_params = [{transform_indices = @transform_0, window_bounds = array<i64: 8, 128>}, {pipeline_mode = #tpu.pipeline_mode<synchronous>, transform_indices = @transform_1, window_bounds = array<i64: 48, 128>}, {transform_indices = @transform_2, window_bounds = array<i64: 8, 128>}]} {
    %c0 = arith.constant 0 : index
    %c0_0 = arith.constant 0 : index
    %0 = vector.load %arg2[%c0, %c0_0] : memref<48x128xf32, #tpu.memory_space<vmem>>, vector<48x128xf32>
    %1 = vector.extract_strided_slice %0 {offsets = [0, 0], sizes = [32, 8], strides = [1, 1]} : vector<48x128xf32> to vector<32x8xf32>
    %2 = vector.extract_strided_slice %0 {offsets = [0, 32], sizes = [32, 32], strides = [1, 1]} : vector<48x128xf32> to vector<32x32xf32>
    %3 = vector.extract_strided_slice %0 {offsets = [0, 64], sizes = [32, 32], strides = [1, 1]} : vector<48x128xf32> to vector<32x32xf32>
    %4 = vector.extract_strided_slice %0 {offsets = [32, 0], sizes = [8, 32], strides = [1, 1]} : vector<48x128xf32> to vector<8x32xf32>
    %5 = vector.extract_strided_slice %0 {offsets = [0, 8], sizes = [32, 4], strides = [1, 1]} : vector<48x128xf32> to vector<32x4xf32>
    %6 = vector.extract_strided_slice %5 {offsets = [0, 0], sizes = [32, 1], strides = [1, 1]} : vector<32x4xf32> to vector<32x1xf32>
    %7 = vector.extract_strided_slice %5 {offsets = [0, 1], sizes = [32, 1], strides = [1, 1]} : vector<32x4xf32> to vector<32x1xf32>
    %8 = vector.extract_strided_slice %5 {offsets = [0, 2], sizes = [32, 1], strides = [1, 1]} : vector<32x4xf32> to vector<32x1xf32>
    %9 = vector.extract_strided_slice %5 {offsets = [0, 3], sizes = [8, 1], strides = [1, 1]} : vector<32x4xf32> to vector<8x1xf32>
    %c0_1 = arith.constant 0 : index
    %c0_2 = arith.constant 0 : index
    %10 = vector.load %arg1[%c0_1, %c0_2] : memref<8x128xf32, #tpu.memory_space<vmem>>, vector<8x128xf32>
    %cst = arith.constant dense<0.000000e+00> : vector<32x128xf32>
    %11 = tpu.matmul %1, %10, %cst {dimension_numbers = #tpu.dot_dimension_numbers<[1], [0], [0], [1], [0, 0, 1, 1], [], []>} : vector<32x8xf32>, vector<8x128xf32>, vector<32x128xf32> -> vector<32x128xf32>
    %12 = vector.broadcast %6 : vector<32x1xf32> to vector<32x128xf32>
    %13 = arith.addf %11, %12 : vector<32x128xf32>
    %cst_3 = arith.constant 0.000000e+00 : f32
    %14 = vector.broadcast %cst_3 : f32 to vector<32x128xf32>
    %15 = arith.maximumf %13, %14 : vector<32x128xf32>
    %cst_4 = arith.constant dense<0.000000e+00> : vector<32x128xf32>
    %16 = tpu.matmul %2, %15, %cst_4 {dimension_numbers = #tpu.dot_dimension_numbers<[1], [0], [0], [1], [0, 0, 1, 1], [], []>} : vector<32x32xf32>, vector<32x128xf32>, vector<32x128xf32> -> vector<32x128xf32>
    %17 = vector.broadcast %7 : vector<32x1xf32> to vector<32x128xf32>
    %18 = arith.addf %16, %17 : vector<32x128xf32>
    %cst_5 = arith.constant 0.000000e+00 : f32
    %19 = vector.broadcast %cst_5 : f32 to vector<32x128xf32>
    %20 = arith.maximumf %18, %19 : vector<32x128xf32>
    %cst_6 = arith.constant dense<0.000000e+00> : vector<32x128xf32>
    %21 = tpu.matmul %3, %20, %cst_6 {dimension_numbers = #tpu.dot_dimension_numbers<[1], [0], [0], [1], [0, 0, 1, 1], [], []>} : vector<32x32xf32>, vector<32x128xf32>, vector<32x128xf32> -> vector<32x128xf32>
    %22 = vector.broadcast %8 : vector<32x1xf32> to vector<32x128xf32>
    %23 = arith.addf %21, %22 : vector<32x128xf32>
    %cst_7 = arith.constant 0.000000e+00 : f32
    %24 = vector.broadcast %cst_7 : f32 to vector<32x128xf32>
    %25 = arith.maximumf %23, %24 : vector<32x128xf32>
    %cst_8 = arith.constant dense<0.000000e+00> : vector<8x128xf32>
    %26 = tpu.matmul %4, %25, %cst_8 {dimension_numbers = #tpu.dot_dimension_numbers<[1], [0], [0], [1], [0, 0, 1, 1], [], []>} : vector<8x32xf32>, vector<32x128xf32>, vector<8x128xf32> -> vector<8x128xf32>
    %27 = vector.broadcast %9 : vector<8x1xf32> to vector<8x128xf32>
    %28 = arith.addf %26, %27 : vector<8x128xf32>
    %c0_9 = arith.constant 0 : index
    %c0_10 = arith.constant 0 : index
    %29 = vector.load %arg3[%c0_9, %c0_10] : memref<8x128xf32, #tpu.memory_space<vmem>>, vector<8x128xf32>
    tpu.vector_store %arg3[%c0_9, %c0_10], %28 {strides = array<i32>} : memref<8x128xf32, #tpu.memory_space<vmem>>, vector<8x128xf32>,
    return
  }
  func.func @transform_0(%arg0: i32) -> (i32, i32) {
    %c0_i32 = arith.constant 0 : i32
    %c0_i32_0 = arith.constant 0 : i32
    return %c0_i32, %arg0 : i32, i32
  }
  func.func @transform_1(%arg0: i32) -> (i32, i32) {
    %c0_i32 = arith.constant 0 : i32
    %c0_i32_0 = arith.constant 0 : i32
    %c0_i32_1 = arith.constant 0 : i32
    return %c0_i32, %c0_i32_0 : i32, i32
  }
  func.func @transform_2(%arg0: i32) -> (i32, i32) {
    %c0_i32 = arith.constant 0 : i32
    %c0_i32_0 = arith.constant 0 : i32
    return %c0_i32, %arg0 : i32, i32
  }
}

</mosaic_0001>

<bundles_post_ra>
// kernel: dqn_forward.1
= control target key start
LH: loop header
LB: loop body
LE: loop exit
PB: predicated region body
PF: predicated region fallthrough
CT: control target
= control target key end

     0   :  { %7 = vsyncpa [#allocation3], 0  ;;  %s325_s12 = smov [#allocation2]   ;;  %s326_s14 = smov 128   ;;  %s404_s0 = inlined_call_operand.vmem [shape: f32[8,128], index: 0, kind: input, shape index: {}]   ;;  %s405_s1 = inlined_call_operand.hbm [shape: f32[48,128], index: 1, kind: input, shape index: {}]   ;;  %s406_s2 = inlined_call_operand.vmem [shape: f32[8,128], index: 2, kind: output, shape index: {}]  }
   0x1   :  { %s14_s11 = sshll.u32 %s405_s1, 4  ;;  %s16_s13 = sshll.u32 %s325_s12, 4  ;;  %s15_s11 = int_to_ptr.hbm [resolvable:$true] %s14_s11  ;;  %s17_s13 = int_to_ptr.vmem [resolvable:$true] %s16_s13 }
   0x2   :  { %s327_s15 = smov 8  }
   0x3   :  { %22 = dma.hbm_to_vmem [thread:$0]  %s15_s11, 768, %s17_s13, [#allocation3], %s326_s14, %s326_s14, %s327_s15  }
   0x4   :  { %323 = dma.done.wait [#allocation3], 768  }
   0x5   :  { %324 = vsyncadd [#allocation3], 4294966528  ;;  %v328_v0 = vmov 8   ;;  %vm53_vm0 = vcmask 64512   ;;  %v32_v1 = vld [vmem:[%s404_s0] sm:$0xff]  ;;  %v357_v3 = vld [vmem:[#allocation2 + $0x8] sm:$0xff] }
   0x6   :  { %290 = vset.pattern.permute.xlu1 %v328_v0  ;;  %289 = vset.pattern.permute.xlu0 %v328_v0  ;;  %v355_v2 = vld [vmem:[#allocation2] sm:$0xff]  ;;  %v360_v4 = vld [vmem:[#allocation2 + $0x18] sm:$0xff]  ;;  %s329_s1 = smov 96   ;;  %v367_v5 = vld [vmem:[#allocation2 + $0x10] sm:$0xff]  ;;  %v330_v11 = vmov 9   ;;  %s331_s0 = smov 64  }
   0x7   :  { %77 = vmatpush.msra.mxu0 %v32_v1  ;;  %40 = vperm.xlu1 %290, %v357_v3   ;;  %vm119_vm1 = vcmask 261120   ;;  %v332_v33 = vmov 10   ;;  %v333_v48 = vmov 11   ;;  %v31_v1 = vld [vmem:[#allocation2 + $0x20] sm:$0xff] }
   0x8   :  { %259 = vmatmul.msk.f32.vlgmr.msra.gmra.mxu0 %vm53_vm0, %v355_v2  ;;  %50 = vperm.xlu0 %289, %v360_v4  }
   0x9   :  { %111 = vrot.lane.b32.xlu2 %v355_v2, %s329_s1 }
   0xa   :  { %291 = vset.pattern.permute.xlu2 %v330_v11 }
   0xf   :  { %35 = vperm.xlu1 %290, %v355_v2  }
  0x10   :  { %260 = vmatmul.msk.f32.gmra.mxu0 %vm53_vm0, %v357_v3  ;;  %45 = vperm.xlu0 %289, %v367_v5  }
  0x11   :  { %113 = vrot.lane.b32.xlu2 %v357_v3, %s329_s1 }
  0x17   :  { %115 = vrot.lane.b32.xlu1 %v367_v5, %s329_s1 }
  0x18   :  { %261 = vmatmul.msk.f32.gmra.mxu0 %vm53_vm0, %v367_v5  ;;  %117 = vrot.lane.b32.xlu0 %v360_v4, %s329_s1 }
  0x19   :  { %293 = vset.pattern.permute.xlu1 %v330_v11  ;;  %292 = vset.pattern.permute.xlu0 %v330_v11 }
  0x1a   :  { %108 = vperm.xlu2 %291, %v360_v4  }
  0x1f   :  { %100 = vperm.xlu1 %293, %v357_v3  }
  0x20   :  { %262 = vmatmul.msk.f32.gmra.mxu0 %vm53_vm0, %v360_v4  ;;  %104 = vperm.xlu0 %292, %v367_v5  }
  0x22   :  { %96 = vperm.xlu2 %291, %v355_v2  }
  0x27   :  { %177 = vrot.lane.b32.xlu1 %v355_v2, %s331_s0 }
  0x28   :  { %183 = vrot.lane.b32.xlu0 %v360_v4, %s331_s0  ;;  %296 = vset.pattern.permute.xlu1 %v332_v33 }
  0x29   :  { %295 = vset.pattern.permute.xlu0 %v332_v33 }
  0x2a   :  { %179 = vrot.lane.b32.xlu2 %v357_v3, %s331_s0 }
  0x2b   :  { %294 = vset.pattern.permute.xlu2 %v332_v33 }
  0x2f   :  { %181 = vrot.lane.b32.xlu1 %v367_v5, %s331_s0 }
  0x30   :  { %170 = vperm.xlu0 %295, %v367_v5  }
  0x32   :  { %174 = vperm.xlu2 %294, %v360_v4  }
  0x37   :  { %166 = vperm.xlu1 %296, %v357_v3  }
  0x38   :  { %298 = vset.pattern.permute.xlu0 %v333_v48 }
  0x3a   :  { %162 = vperm.xlu2 %294, %v355_v2  }
  0x3f   :  { %297 = vset.pattern.permute.xlu1 %v333_v48 }
  0x40   :  { %227 = vperm.xlu1 %297, %v355_v2  }
  0x63   :  { %v112_v22 = vpop.permute.xlu2 %111 }
  0x6b   :  { %v114_v25 = vpop.permute.xlu2 %113 }
  0x74   :  { %v109_v28 = vpop.permute.xlu2 %108 }
  0x79   :  { %v41_v9 = vpop.permute.xlu1 %40 }
  0x7a   :  { %v51_v8 = vpop.permute.xlu0 %50 }
  0x7c   :  { %v97_v36 = vpop.permute.xlu2 %96 }
  0x81   :  { %v36_v16 = vpop.permute.xlu1 %35 }
  0x82   :  { %v46_v12 = vpop.permute.xlu0 %45 }
  0x84   :  { %v180_v46 = vpop.permute.xlu2 %179 }
  0x85   :  { %v79_v6 = vpop.f32.mrf.mxu0 }
  0x86   :  { %v80_v19 = vadd.f32 %v79_v6, %v36_v16 }
  0x88   :  { %v91_v23 = vmax.f32 %v80_v19, 0.0 }
  0x89   :  { %v116_v26 = vpop.permute.xlu1 %115 }
  0x8a   :  { %v118_v24 = vpop.permute.xlu0 %117 }
  0x8c   :  { %v175_v49 = vpop.permute.xlu2 %174 }
  0x8d   :  { %v82_v7 = vpop.f32.mrf.mxu0 }
  0x8e   :  { %v83_v17 = vadd.f32 %v82_v7, %v41_v9 }
  0x90   :  { %v92_v21 = vmax.f32 %v83_v17, 0.0 }
  0x91   :  { %v101_v34 = vpop.permute.xlu1 %100 }
  0x92   :  { %v105_v35 = vpop.permute.xlu0 %104 }
  0x94   :  { %v163_v57 = vpop.permute.xlu2 %162 }
  0x95   :  { %v85_v10 = vpop.f32.mrf.mxu0 }
  0x96   :  { %v86_v14 = vadd.f32 %v85_v10, %v46_v12 }
  0x98   :  { %v93_v20 = vmax.f32 %v86_v14, 0.0 }
  0x99   :  { %v178_v44 = vpop.permute.xlu1 %177 }
  0x9a   :  { %v184_v45 = vpop.permute.xlu0 %183 }
  0x9d   :  { %v88_v13 = vpop.f32.mrf.mxu0 }
  0x9e   :  { %v89_v15 = vadd.f32 %v88_v13, %v51_v8 }
  0xa0   :  { %v94_v18 = vmax.f32 %v89_v15, 0.0 }
  0xa1   :  { %v182_v47 = vpop.permute.xlu1 %181 }
  0xa2   :  { %140 = vmatpush.msra.mxu1 %v94_v18  ;;  %272 = vmatpush.msra.mxu3 %v94_v18  ;;  %v171_v56 = vpop.permute.xlu0 %170 }
  0xa4   :  { %141 = vmatpush.msra.mxu1 %v93_v20  ;;  %273 = vmatpush.msra.mxu3 %v93_v20 }
  0xa6   :  { %142 = vmatpush.msra.mxu1 %v92_v21  ;;  %274 = vmatpush.msra.mxu3 %v92_v21 }
  0xa8   :  { %143 = vmatpush.msra.mxu1 %v91_v23  ;;  %275 = vmatpush.msra.mxu3 %v91_v23 }
  0xa9   :  { %263 = vmatmul.msk.f32.vlgmr.msra.gmra.mxu1 %vm119_vm1, %v112_v22  ;;  %266 = vmatmul.msk.f32.vlgmr.msra.gmra.mxu3 %vm119_vm1, %v118_v24  ;;  %v167_v55 = vpop.permute.xlu1 %166 }
  0xb1   :  { %264 = vmatmul.msk.f32.gmra.mxu1 %vm119_vm1, %v114_v25 }
  0xb2   :  { %v228_v2 = vpop.permute.xlu1 %227 }
  0xb9   :  { %265 = vmatmul.msk.f32.gmra.mxu1 %vm119_vm1, %v116_v26 }
 0x126   :  { %v145_v27 = vpop.f32.mrf.mxu1 }
 0x127   :  { %v146_v40 = vadd.f32 %v145_v27, %v97_v36 }
 0x129   :  { %v157_v43 = vmax.f32 %v146_v40, 0.0 }
 0x12c   :  { %v154_v29 = vpop.f32.mrf.mxu3 }
 0x12d   :  { %v155_v30 = vadd.f32 %v154_v29, %v109_v28 }
 0x12e   :  { %v148_v31 = vpop.f32.mrf.mxu1 }
 0x12f   :  { %v160_v32 = vmax.f32 %v155_v30, 0.0  ;;  %v149_v38 = vadd.f32 %v148_v31, %v101_v34 }
 0x131   :  { %205 = vmatpush.msra.mxu2 %v160_v32  ;;  %276 = vmatpush.msrb.mxu3 %v160_v32  ;;  %v158_v42 = vmax.f32 %v149_v38, 0.0 }
 0x136   :  { %v151_v37 = vpop.f32.mrf.mxu1 }
 0x137   :  { %v152_v39 = vadd.f32 %v151_v37, %v105_v35 }
 0x139   :  { %v159_v41 = vmax.f32 %v152_v39, 0.0 }
 0x13b   :  { %206 = vmatpush.msra.mxu2 %v159_v41  ;;  %277 = vmatpush.msrb.mxu3 %v159_v41 }
 0x13d   :  { %207 = vmatpush.msra.mxu2 %v158_v42  ;;  %278 = vmatpush.msrb.mxu3 %v158_v42 }
 0x13f   :  { %208 = vmatpush.msra.mxu2 %v157_v43  ;;  %279 = vmatpush.msrb.mxu3 %v157_v43 }
 0x140   :  { %267 = vmatmul.msk.f32.vlgmr.msra.gmra.mxu2 %vm119_vm1, %v178_v44  ;;  %270 = vmatmul.msk.f32.vlgmr.msrb.gmra.mxu3 %vm119_vm1, %v184_v45 }
 0x148   :  { %268 = vmatmul.msk.f32.gmra.mxu2 %vm119_vm1, %v180_v46 }
 0x150   :  { %269 = vmatmul.msk.f32.gmra.mxu2 %vm119_vm1, %v182_v47 }
 0x1c3   :  { %v210_v50 = vpop.f32.mrf.mxu2  ;;  %v219_v51 = vpop.f32.mrf.mxu3 }
 0x1c4   :  { %v220_v52 = vadd.f32 %v219_v51, %v175_v49  ;;  %v211_v61 = vadd.f32 %v210_v50, %v163_v57 }
 0x1c6   :  { %v225_v53 = vmax.f32 %v220_v52, 0.0  ;;  %v222_v0 = vmax.f32 %v211_v61, 0.0 }
 0x1c8   :  { %245 = vmatpush.msra.mxu3 %v225_v53 }
 0x1cb   :  { %v213_v54 = vpop.f32.mrf.mxu2 }
 0x1cc   :  { %v214_v59 = vadd.f32 %v213_v54, %v167_v55 }
 0x1ce   :  { %v223_v63 = vmax.f32 %v214_v59, 0.0 }
 0x1d3   :  { %v216_v58 = vpop.f32.mrf.mxu2 }
 0x1d4   :  { %v217_v60 = vadd.f32 %v216_v58, %v171_v56 }
 0x1d6   :  { %v224_v62 = vmax.f32 %v217_v60, 0.0 }
 0x1d8   :  { %246 = vmatpush.msra.mxu3 %v224_v62 }
 0x1da   :  { %247 = vmatpush.msra.mxu3 %v223_v63 }
 0x1dc   :  { %248 = vmatpush.msra.mxu3 %v222_v0 }
 0x1dd   :  { %271 = vmatmul.msk.f32.vlgmr.msra.gmra.mxu3 %vm119_vm1, %v31_v1 }
 0x260   :  { %v250_v3 = vpop.f32.mrf.mxu3 }
 0x261   :  { %v251_v4 = vadd.f32 %v250_v3, %v228_v2 }
 0x263   :  { %253 = vst [vmem:[%s406_s2] sm:$0xff] %v251_v4 }
 0x264   :  { %258 = vsyncpa [#allocation3], 1 }

</bundles_post_ra>
